<compile_context>
chip_gen: v6e
topology: v6e:2x2x1
jax: 0.10.0
libtpu: 0.0.40
codegen_flags: <defaults>
</compile_context>

<pallas_src>
import functools
import math

import jax
import jax.numpy as jnp
from jax.experimental import pallas as pl
from jax.experimental.pallas import tpu as pltpu


def _round_up(x: int, m: int) -> int:
    return ((x + m - 1) // m) * m


def _round_down(x: int, m: int) -> int:
    return (x // m) * m


def _vmem_capacity_bytes() -> int:
    """Physical VMEM on this chip; conservative (v7x-sized) fallback."""
    try:
        return int(pltpu.get_tpu_info().vmem_capacity_bytes)
    except Exception:
        return 64 * 1024 * 1024


def _pick_row_tile(rows: int, hidden: int, hidden_p: int,
                   param_itemsize: int, vmem_budget_bytes: int) -> int:
    """Largest row tile whose double-buffered working set fits the budget."""
    h_lane = _round_up(hidden, 128)            # VMEM lane padding of streamed tiles

    # Grid-invariant weights/biases: constant index_map => no re-DMA, but the
    # pipeline still allocates 2 buffers each.
    weight_bytes = 2 * (2 * hidden * hidden_p * param_itemsize + (hidden_p + h_lane) * 4)

    # Per row: h + out tiles double-buffered (f32) plus ~live f32 intermediates
    # at lane-padded widths (a at Hp; s/e/p at H).
    per_row = (2 * 2 * h_lane + 2 * hidden_p + 3 * h_lane) * 4

    budget = max(vmem_budget_bytes - weight_bytes, per_row * 8)
    tn = int(budget // per_row)

    # Keep the grid >= ~8 steps when there is enough work (v7x megacore + deep
    # DMA pipeline); for tiny inputs just take everything in one block.
    if rows >= 8 * 8:
        tn = min(tn, max(8, _round_down(rows // 8, 8)))

    tn = max(8, _round_down(tn, 8))
    if rows <= tn:
        return rows                            # block dim == full array dim (legal)
    return tn


def _attention_kernel(h_ref, w1_ref, b1_ref, w2_ref, b2_ref, o_ref):
    # h_ref/o_ref: (TN, H)   w1_ref: (H, Hp)   w2_ref: (Hp, H)
    # b1_ref: (1, Hp) f32    b2_ref: (1, H)  f32
    h = h_ref[...]
    wdt = w1_ref.dtype

    # linear1 + tanh  (MXU matmul, f32 accumulation; tanh on the EUP)
    a = jnp.dot(h.astype(wdt), w1_ref[...], preferred_element_type=jnp.float32)
    a = jnp.tanh(a + b1_ref[...])                       # (TN, Hp); padded cols are 0

    # linear2 back to the real hidden width -> no padded columns, no mask needed
    s = jnp.dot(a.astype(wdt), w2_ref[...], preferred_element_type=jnp.float32)
    s = s + b2_ref[...]                                 # (TN, H)

    # numerically-stable softmax over the hidden dim
    s = s - jnp.max(s, axis=-1, keepdims=True)
    e = jnp.exp(s)
    p = e / jnp.sum(e, axis=-1, keepdims=True)

    # context = attn_weights * h
    o_ref[...] = (p * h.astype(jnp.float32)).astype(o_ref.dtype)


def prepare_params(w1, b1, w2, b2, param_dtype=jnp.float32):
    """One-time parameter prep (call once, outside the per-call hot path).

    Transposes torch-layout (out, in) weights to (in, out) and pads only the
    *internal* hidden dim (linear1's output / linear2's input) to a lane-dense
    multiple of 128.  Zero padding is exact: padded columns of tanh(...) are
    tanh(0 + 0) = 0 and the matching W2^T rows are zero.

    param_dtype=jnp.bfloat16 halves resident-weight VMEM (v7x's 64 MiB) and
    doubles MXU rate; accumulation stays f32 inside the kernel.
    """
    H = int(w1.shape[0])
    Hp = _round_up(H, 128)

    w1_t = jnp.asarray(w1, jnp.float32).T                             # (H, H)
    w1_t = jnp.pad(w1_t, ((0, 0), (0, Hp - H))).astype(param_dtype)   # (H, Hp)
    b1_r = jnp.pad(jnp.asarray(b1, jnp.float32), (0, Hp - H)).reshape(1, Hp)

    w2_t = jnp.asarray(w2, jnp.float32).T                             # (H, H)
    w2_t = jnp.pad(w2_t, ((0, Hp - H), (0, 0))).astype(param_dtype)   # (Hp, H)
    b2_r = jnp.asarray(b2, jnp.float32).reshape(1, H)

    return (w1_t, b1_r, w2_t, b2_r)


@functools.partial(jax.jit, static_argnames=("row_tile",))
def self_attention(h, params, *, row_tile=None):
    """h: (..., H) float32, e.g. (B, S, H).  params: output of prepare_params()."""
    w1_t, b1_r, w2_t, b2_r = params
    H = int(h.shape[-1])
    Hp = int(w1_t.shape[-1])
    assert int(w1_t.shape[0]) == H, "hidden dim of h must match the prepared weights"

    orig_shape = h.shape
    rows = int(math.prod(orig_shape[:-1]))
    h2d = h.reshape(rows, H)                       # metadata-only, no HBM copy

    vmem_cap = _vmem_capacity_bytes()
    if row_tile is not None:
        TN = max(1, min(int(row_tile), rows))
    else:
        TN = _pick_row_tile(rows, H, Hp, jnp.dtype(w1_t.dtype).itemsize,
                            int(vmem_cap * 0.6))
    grid = (pl.cdiv(rows, TN),)

    out2d = pl.pallas_call(
        _attention_kernel,
        out_shape=jax.ShapeDtypeStruct((rows, H), h.dtype),
        grid=grid,
        in_specs=[
            pl.BlockSpec((TN, H), lambda i: (i, 0)),   # h tile  (pipelined)
            pl.BlockSpec((H, Hp), lambda i: (0, 0)),   # W1^T    (VMEM-resident)
            pl.BlockSpec((1, Hp), lambda i: (0, 0)),   # b1      (VMEM-resident)
            pl.BlockSpec((Hp, H), lambda i: (0, 0)),   # W2^T    (VMEM-resident)
            pl.BlockSpec((1, H), lambda i: (0, 0)),    # b2      (VMEM-resident)
        ],
        out_specs=pl.BlockSpec((TN, H), lambda i: (i, 0)),
        compiler_params=pltpu.CompilerParams(
            dimension_semantics=("parallel",),         # v7x megacore sharding
            vmem_limit_bytes=int(vmem_cap * 0.9),      # raise above scoped default
        ),
    )(h2d, w1_t, b1_r, w2_t, b2_r)

    return out2d.reshape(orig_shape)


def _reference(h, w1, b1, w2, b2):
    a = jnp.tanh(jnp.einsum("bsh,oh->bso", h, w1) + b1)
    s = jnp.einsum("bsh,oh->bso", a, w2) + b2
    p = jax.nn.softmax(s, axis=-1)
    return p * h


if __name__ == "__main__":
    key = jax.random.PRNGKey(0)
    B, S, H = 2, 8, 32

    k_h, k_w1, k_b1, k_w2, k_b2 = jax.random.split(key, 5)
    h = jax.random.normal(k_h, (B, S, H), dtype=jnp.float32)

    # nn.Linear default init U(-1/sqrt(in), 1/sqrt(in)), torch layout (out, in).
    bound = 1.0 / (H ** 0.5)
    w1 = jax.random.uniform(k_w1, (H, H), jnp.float32, -bound, bound)
    b1 = jax.random.uniform(k_b1, (H,), jnp.float32, -bound, bound)
    w2 = jax.random.uniform(k_w2, (H, H), jnp.float32, -bound, bound)
    b2 = jax.random.uniform(k_b2, (H,), jnp.float32, -bound, bound)

    ref = _reference(h, w1, b1, w2, b2)

    # 1) f32 weights, auto row tile (single grid step at this tiny size).
    params = prepare_params(w1, b1, w2, b2)
    out = jax.block_until_ready(self_attention(h, params))
    assert out.shape == (B, S, H)
    assert jnp.allclose(out, ref, atol=5e-3, rtol=5e-3), "mismatch vs reference (f32)"

    # 2) Forced small row tile -> multi-step grid; exercises the pipelined
    #    h/out tiles and the VMEM-resident weight path.
    out_tiled = jax.block_until_ready(self_attention(h, params, row_tile=8))
    assert jnp.allclose(out_tiled, ref, atol=5e-3, rtol=5e-3), "mismatch (tiled)"

    # 3) bf16 weights (v7x/v6e VMEM + MXU optimization), f32 accumulation.
    params_bf16 = prepare_params(w1, b1, w2, b2, param_dtype=jnp.bfloat16)
    out_bf16 = jax.block_until_ready(self_attention(h, params_bf16))
    assert jnp.allclose(out_bf16, ref, atol=5e-2, rtol=5e-2), "mismatch (bf16 weights)"

    print("KERNEL_OK")
</pallas_src>

<mosaic_0001>
module attributes {stable_mosaic.version = 11 : i64} {
  func.func @_attention_kernel(%arg0: i32, %arg1: memref<16x32xf32, #tpu.memory_space<vmem>>, %arg2: memref<32x128xf32, #tpu.memory_space<vmem>>, %arg3: memref<1x128xf32, #tpu.memory_space<vmem>>, %arg4: memref<128x32xf32, #tpu.memory_space<vmem>>, %arg5: memref<1x32xf32, #tpu.memory_space<vmem>>, %arg6: memref<16x32xf32, #tpu.memory_space<vmem>>) attributes {dimension_semantics = [#tpu.dimension_semantics<parallel>], iteration_bounds = array<i64: 1>, scalar_prefetch = 0 : i64, scratch_operands = 0 : i64, tpu.core_type = #tpu.core_type<tc>, window_params = [{transform_indices = @transform_0, window_bounds = array<i64: 16, 32>}, {pipeline_mode = #tpu.pipeline_mode<synchronous>, transform_indices = @transform_1, window_bounds = array<i64: 32, 128>}, {pipeline_mode = #tpu.pipeline_mode<synchronous>, transform_indices = @transform_2, window_bounds = array<i64: 1, 128>}, {pipeline_mode = #tpu.pipeline_mode<synchronous>, transform_indices = @transform_3, window_bounds = array<i64: 128, 32>}, {pipeline_mode = #tpu.pipeline_mode<synchronous>, transform_indices = @transform_4, window_bounds = array<i64: 1, 32>}, {transform_indices = @transform_5, window_bounds = array<i64: 16, 32>}]} {
    %c0 = arith.constant 0 : index
    %c0_0 = arith.constant 0 : index
    %0 = vector.load %arg1[%c0, %c0_0] : memref<16x32xf32, #tpu.memory_space<vmem>>, vector<16x32xf32>
    %c0_1 = arith.constant 0 : index
    %c0_2 = arith.constant 0 : index
    %1 = vector.load %arg2[%c0_1, %c0_2] : memref<32x128xf32, #tpu.memory_space<vmem>>, vector<32x128xf32>
    %cst = arith.constant dense<0.000000e+00> : vector<16x128xf32>
    %2 = tpu.matmul %0, %1, %cst {dimension_numbers = #tpu.dot_dimension_numbers<[1], [0], [0], [1], [0, 0, 1, 1], [], []>} : vector<16x32xf32>, vector<32x128xf32>, vector<16x128xf32> -> vector<16x128xf32>
    %c0_3 = arith.constant 0 : index
    %c0_4 = arith.constant 0 : index
    %3 = vector.load %arg3[%c0_3, %c0_4] : memref<1x128xf32, #tpu.memory_space<vmem>>, vector<1x128xf32>
    %4 = vector.broadcast %3 : vector<1x128xf32> to vector<16x128xf32>
    %5 = arith.addf %2, %4 : vector<16x128xf32>
    %6 = math.tanh %5 : vector<16x128xf32>
    %c0_5 = arith.constant 0 : index
    %c0_6 = arith.constant 0 : index
    %7 = vector.load %arg4[%c0_5, %c0_6] : memref<128x32xf32, #tpu.memory_space<vmem>>, vector<128x32xf32>
    %cst_7 = arith.constant dense<0.000000e+00> : vector<16x32xf32>
    %8 = tpu.matmul %6, %7, %cst_7 {dimension_numbers = #tpu.dot_dimension_numbers<[1], [0], [0], [1], [0, 0, 1, 1], [], []>} : vector<16x128xf32>, vector<128x32xf32>, vector<16x32xf32> -> vector<16x32xf32>
    %c0_8 = arith.constant 0 : index
    %c0_9 = arith.constant 0 : index
    %9 = vector.load %arg5[%c0_8, %c0_9] : memref<1x32xf32, #tpu.memory_space<vmem>>, vector<1x32xf32>
    %10 = vector.broadcast %9 : vector<1x32xf32> to vector<16x32xf32>
    %11 = arith.addf %8, %10 : vector<16x32xf32>
    %cst_10 = arith.constant dense<0xFF800000> : vector<16xf32>
    %12 = vector.multi_reduction <maximumf>, %11, %cst_10 [1] : vector<16x32xf32> to vector<16xf32>
    %13 = vector.shape_cast %12 : vector<16xf32> to vector<16x1xf32>
    %14 = vector.broadcast %13 : vector<16x1xf32> to vector<16x32xf32>
    %15 = arith.subf %11, %14 : vector<16x32xf32>
    %16 = math.exp %15 : vector<16x32xf32>
    %cst_11 = arith.constant dense<0.000000e+00> : vector<16xf32>
    %17 = vector.multi_reduction <add>, %16, %cst_11 [1] : vector<16x32xf32> to vector<16xf32>
    %18 = vector.shape_cast %17 : vector<16xf32> to vector<16x1xf32>
    %19 = vector.broadcast %18 : vector<16x1xf32> to vector<16x32xf32>
    %20 = arith.divf %16, %19 : vector<16x32xf32>
    %21 = arith.mulf %20, %0 : vector<16x32xf32>
    %c0_12 = arith.constant 0 : index
    %c0_13 = arith.constant 0 : index
    %22 = vector.load %arg6[%c0_12, %c0_13] : memref<16x32xf32, #tpu.memory_space<vmem>>, vector<16x32xf32>
    tpu.vector_store %arg6[%c0_12, %c0_13], %21 {strides = array<i32>} : memref<16x32xf32, #tpu.memory_space<vmem>>, vector<16x32xf32>,
    return
  }
  func.func @transform_0(%arg0: i32) -> (i32, i32) {
    %c0_i32 = arith.constant 0 : i32
    %c0_i32_0 = arith.constant 0 : i32
    return %arg0, %c0_i32 : i32, i32
  }
  func.func @transform_1(%arg0: i32) -> (i32, i32) {
    %c0_i32 = arith.constant 0 : i32
    %c0_i32_0 = arith.constant 0 : i32
    %c0_i32_1 = arith.constant 0 : i32
    return %c0_i32, %c0_i32_0 : i32, i32
  }
  func.func @transform_2(%arg0: i32) -> (i32, i32) {
    %c0_i32 = arith.constant 0 : i32
    %c0_i32_0 = arith.constant 0 : i32
    %c0_i32_1 = arith.constant 0 : i32
    return %c0_i32, %c0_i32_0 : i32, i32
  }
  func.func @transform_3(%arg0: i32) -> (i32, i32) {
    %c0_i32 = arith.constant 0 : i32
    %c0_i32_0 = arith.constant 0 : i32
    %c0_i32_1 = arith.constant 0 : i32
    return %c0_i32, %c0_i32_0 : i32, i32
  }
  func.func @transform_4(%arg0: i32) -> (i32, i32) {
    %c0_i32 = arith.constant 0 : i32
    %c0_i32_0 = arith.constant 0 : i32
    %c0_i32_1 = arith.constant 0 : i32
    return %c0_i32, %c0_i32_0 : i32, i32
  }
  func.func @transform_5(%arg0: i32) -> (i32, i32) {
    %c0_i32 = arith.constant 0 : i32
    %c0_i32_0 = arith.constant 0 : i32
    return %arg0, %c0_i32 : i32, i32
  }
}

</mosaic_0001>

<bundles_post_ra>
// kernel: self_attention.1
= control target key start
LH: loop header
LB: loop body
LE: loop exit
PB: predicated region body
PF: predicated region fallthrough
CT: control target
= control target key end

     0   :  { %vm34_vm0 = vcmask 261120   ;;  %s493_s0 = inlined_call_operand.vmem [shape: f32[16,32], index: 0, kind: input, shape index: {}]   ;;  %s494_s1 = inlined_call_operand.vmem [shape: f32[32,128], index: 1, kind: input, shape index: {}]   ;;  %s495_s2 = inlined_call_operand.vmem [shape: f32[1,128], index: 2, kind: input, shape index: {}]   ;;  %s496_s3 = inlined_call_operand.vmem [shape: f32[128,32], index: 3, kind: input, shape index: {}]   ;;  %s497_s4 = inlined_call_operand.vmem [shape: f32[1,32], index: 4, kind: input, shape index: {}]   ;;  %s498_s5 = inlined_call_operand.hbm [shape: f32[16,32], index: 5, kind: output, shape index: {}]  }
   0x1   :  { %v26_v0 = vld [vmem:[%s494_s1 + $0x18] sm:$0xff]  ;;  %v25_v1 = vld [vmem:[%s494_s1 + $0x10] sm:$0xff]  ;;  %v411_v2 = vld [vmem:[%s493_s0] sm:$0xff] }
   0x2   :  { %286 = vmatprep.subr.mxu0 %v26_v0  ;;  %v24_v3 = vld [vmem:[%s494_s1 + $0x8] sm:$0xff]  ;;  %294 = vmatprep.mubr.msk.f32.mxu0 %vm34_vm0, %v411_v2  ;;  %v133_v4 = vld [vmem:[%s496_s3 + $0x78] sm:$0xff]  ;;  %v132_v5 = vld [vmem:[%s496_s3 + $0x70] sm:$0xff] }
   0x3   :  { %287 = vmatpush3.msra.mxu0 %v26_v0  ;;  %297 = vmatprep.subr.mxu1 %v133_v4  ;;  %v23_v6 = vld [vmem:[%s494_s1] sm:$0xff]  ;;  %v131_v7 = vld [vmem:[%s496_s3 + $0x68] sm:$0xff] }
   0x4   :  { %288 = vmatprep.subr.mxu0 %v25_v1  ;;  %298 = vmatpush3.msra.mxu1 %v133_v4 }
   0x5   :  { %289 = vmatpush3.msra.mxu0 %v25_v1 }
   0x6   :  { %10 = vsyncpa [#allocation3], 0  ;;  %290 = vmatprep.subr.mxu0 %v24_v3  ;;  %299 = vmatprep.subr.mxu1 %v132_v5  ;;  %v433_v8 = vld [vmem:[%s493_s0 + $0x8] sm:$0xff]  ;;  %v130_v9 = vld [vmem:[%s496_s3 + $0x60] sm:$0xff] }
   0x7   :  { %291 = vmatpush3.msra.mxu0 %v24_v3  ;;  %300 = vmatpush3.msra.mxu1 %v132_v5  ;;  %v129_v10 = vld [vmem:[%s496_s3 + $0x58] sm:$0xff]  ;;  %v128_v11 = vld [vmem:[%s496_s3 + $0x50] sm:$0xff]  ;;  %v127_v12 = vld [vmem:[%s496_s3 + $0x48] sm:$0xff] }
   0x8   :  { %292 = vmatprep.subr.mxu0 %v23_v6  ;;  %301 = vmatprep.subr.mxu1 %v131_v7  ;;  %v126_v13 = vld [vmem:[%s496_s3 + $0x40] sm:$0xff]  ;;  %v125_v14 = vld [vmem:[%s496_s3 + $0x38] sm:$0xff]  ;;  %v124_v15 = vld [vmem:[%s496_s3 + $0x30] sm:$0xff] }
   0x9   :  { %293 = vmatpush3.msra.mxu0 %v23_v6  ;;  %302 = vmatpush3.msra.mxu1 %v131_v7  ;;  %v123_v16 = vld [vmem:[%s496_s3 + $0x28] sm:$0xff]  ;;  %v122_v17 = vld [vmem:[%s496_s3 + $0x20] sm:$0xff]  ;;  %v121_v18 = vld [vmem:[%s496_s3 + $0x18] sm:$0xff] }
   0xa   :  { %295 = vmatmul.mubr.msk.f32.vlgmr.msra.gmra.mxu0 %vm34_vm0, %v433_v8  ;;  %303 = vmatprep.subr.mxu1 %v130_v9  ;;  %v120_v19 = vld [vmem:[%s496_s3 + $0x10] sm:$0xff]  ;;  %v119_v20 = vld [vmem:[%s496_s3 + $0x8] sm:$0xff]  ;;  %v118_v21 = vld [vmem:[%s496_s3] sm:$0xff] }
   0xb   :  { %304 = vmatpush3.msra.mxu1 %v130_v9  ;;  %v258_v22 = vld [vmem:[%s495_s2] ss:$0 sm:$0xff]  ;;  %s369_s2 = smov [#allocation2]  }
   0xc   :  { %305 = vmatprep.subr.mxu1 %v129_v10  ;;  %v261_v30 = vld [vmem:[%s497_s4] ss:$0 sm:$0xff]  ;;  %s247_s4 = sshll.u32 %s369_s2, 4  ;;  %s248_s4 = int_to_ptr.vmem [resolvable:$true] %s247_s4 }
   0xd   :  { %306 = vmatpush3.msra.mxu1 %v129_v10  ;;  %s347_s1 = scalar_lea.vmem %s248_s4, 256  ;;  %p352_p1 = scmp.lt.s32.totalorder %s248_s4, %s248_s4 }
   0xe   :  { %307 = vmatprep.subr.mxu1 %v128_v11  ;;  %p348_p0 = scmp.ne.s32.totalorder %s248_s4, %s347_s1  ;;  %p353_p2 = scmp.lt.s32.totalorder %s347_s1, %s347_s1 }
   0xf   :  { %308 = vmatpush3.msra.mxu1 %v128_v11 }
  0x10   :  { %309 = vmatprep.subr.mxu1 %v127_v12  ;;  %p354_p3 = por %p353_p2, %p352_p1 }
  0x11   :  { %310 = vmatpush3.msra.mxu1 %v127_v12 }
  0x12   :  { %311 = vmatprep.subr.mxu1 %v126_v13  ;;  %p355_p4 = pnand %p354_p3, %p348_p0 }
  0x13   :  { %312 = vmatpush3.msra.mxu1 %v126_v13 }
  0x14   :  { %313 = vmatprep.subr.mxu1 %v125_v14 }
  0x15   :  { %314 = vmatpush3.msra.mxu1 %v125_v14 }
  0x16   :  { %315 = vmatprep.subr.mxu1 %v124_v15 }
  0x17   :  { %316 = vmatpush3.msra.mxu1 %v124_v15 }
  0x18   :  { %317 = vmatprep.subr.mxu1 %v123_v16 }
  0x19   :  { %318 = vmatpush3.msra.mxu1 %v123_v16 }
  0x1a   :  { %319 = vmatprep.subr.mxu1 %v122_v17 }
  0x1b   :  { %320 = vmatpush3.msra.mxu1 %v122_v17 }
  0x1c   :  { %321 = vmatprep.subr.mxu1 %v121_v18 }
  0x1d   :  { %322 = vmatpush3.msra.mxu1 %v121_v18 }
  0x1e   :  { %323 = vmatprep.subr.mxu1 %v120_v19 }
  0x1f   :  { %324 = vmatpush3.msra.mxu1 %v120_v19 }
  0x20   :  { %325 = vmatprep.subr.mxu1 %v119_v20 }
  0x21   :  { %326 = vmatpush3.msra.mxu1 %v119_v20 }
  0x22   :  { %327 = vmatprep.subr.mxu1 %v118_v21 }
  0x23   :  { %328 = vmatpush3.msra.mxu1 %v118_v21 }
  0xca   :  { %v296_v23 = vpop.f32.mrf.mxu0 }
  0xcb   :  { %v113_v24 = vadd.f32 %v296_v23, %v258_v22 }
  0xcc   :  { %v107_v25 = vpop.f32.mrf.mxu0 }
  0xcd   :  { %v108_v26 = vadd.f32 %v258_v22, %v107_v25 }
  0xcf   :  { %335 = vtanh.f32 %v108_v26 }
  0xd0   :  { %337 = vtanh.f32 %v113_v24 }
  0xdc   :  { %v336_v27 = vpop.eup %335 }
  0xdd   :  { %v338_v28 = vpop.eup %337  ;;  %329 = vmatprep.mubr.f32.mxu1 %v336_v27 }
  0xde   :  { %330 = vmatmul.mubr.f32.vlgmr.msra.gmra.mxu1 %v338_v28 }
 0x19e   :  { %v331_v29 = vpop.f32.mrf.mxu1 }
 0x19f   :  { %v213_v33 = vadd.f32 %v331_v29, %v261_v30 }
 0x1a0   :  { %v207_v31 = vpop.f32.mrf.mxu1 }
 0x1a1   :  { %v208_v32 = vadd.f32 %v261_v30, %v207_v31  ;;  %v219_v35 = vsel %vm34_vm0, %v213_v33, -inf }
 0x1a3   :  { %v216_v34 = vsel %vm34_vm0, %v208_v32, -inf }
 0x1a4   :  { %217 = vmax.xlane.f32.xlu0 %v216_v34 }
 0x1a8   :  { %220 = vmax.xlane.f32.xlu0 %v219_v35 }
 0x22d   :  { %v218_v36 = vpop.xlane.xlu0 %217 }
 0x22e   :  { %v222_v37 = vsub.f32 %v208_v32, %v218_v36 }
 0x230   :  { %v224_v38 = vmul.f32 1.442695, %v222_v37 }
 0x231   :  { %v221_v39 = vpop.xlane.xlu0 %220 }
 0x232   :  { %339 = vpow2.f32 %v224_v38  ;;  %v223_v40 = vsub.f32 %v213_v33, %v221_v39 }
 0x234   :  { %v226_v41 = vmul.f32 1.442695, %v223_v40 }
 0x236   :  { %341 = vpow2.f32 %v226_v41 }
 0x23f   :  { %v340_v42 = vpop.eup %339 }
 0x240   :  { %v228_v43 = vsel %vm34_vm0, %v340_v42, 0.0 }
 0x241   :  { %229 = vadd.xlane.f32.xlu1 %v228_v43 }
 0x243   :  { %v342_v44 = vpop.eup %341 }
 0x244   :  { %v231_v45 = vsel %vm34_vm0, %v342_v44, 0.0 }
 0x245   :  { %232 = vadd.xlane.f32.xlu1 %v231_v45 }
 0x2ca   :  { %v230_v46 = vpop.xlane.xlu1 %229 }
 0x2cb   :  { %343 = vrcp.f32 %v230_v46 }
 0x2ce   :  { %v233_v47 = vpop.xlane.xlu1 %232 }
 0x2cf   :  { %345 = vrcp.f32 %v233_v47 }
 0x2d8   :  { %v344_v48 = vpop.eup %343 }
 0x2d9   :  { %v235_v49 = vmul.f32 %v344_v48, %v340_v42 }
 0x2db   :  { %v238_v50 = vmul.f32 %v235_v49, %v411_v2 }
 0x2dc   :  { %v346_v51 = vpop.eup %345 }
 0x2dd   :  { %v237_v52 = vmul.f32 %v346_v51, %v342_v44  ;;  %240 = vst.msk [vmem:[#allocation2] sm:$0xff] %vm34_vm0, %v238_v50 }
 0x2df   :  { %v239_v53 = vmul.f32 %v237_v52, %v433_v8 }
 0x2e1   :  { %241 = vst.msk [vmem:[#allocation2 + $0x8] sm:$0xff] %vm34_vm0, %v239_v53 }
 0x2e2   :  { %358 = shalt.err (!%p355_p4)
}
 0x2e3   :  { %s370_s13 = smov 128   ;;  %s371_s0 = smov 8  }
 0x2e4   :  { %253 = dma.vmem_to_hbm [thread:$0]  %s248_s4, 256, %s498_s5, [#allocation3], %s370_s13, %s370_s13, %s371_s0  }
 0x2e5   :  { %367 = dma.done.wait [#allocation3], 256  }
 0x2e6   :  { %368 = vsyncadd [#allocation3], 4294967040 }
 0x2e7   :  { %257 = vsyncpa [#allocation3], 1 }

</bundles_post_ra>
